<compile_context>
chip_gen: v7x
topology: tpu7x:2x2x1
jax: 0.10.0
libtpu: 0.0.40
codegen_flags: <defaults>
</compile_context>

<pallas_src>
import functools

import jax
import jax.numpy as jnp
from jax import lax
from jax.experimental import pallas as pl
from jax.experimental.pallas import tpu as pltpu


model_bsList = ['browDownLeft', 'browDownRight', 'browInnerUp', 'browOuterUpLeft',
                'browOuterUpRight', 'cheekPuff', 'cheekSquintLeft', 'cheekSquintRight',
                'eyeBlinkLeft', 'eyeBlinkRight', 'eyeLookDownLeft', 'eyeLookDownRight',
                'eyeLookInLeft', 'eyeLookInRight', 'eyeLookOutLeft', 'eyeLookOutRight',
                'eyeLookUpLeft', 'eyeLookUpRight', 'eyeSquintLeft', 'eyeSquintRight',
                'eyeWideLeft', 'eyeWideRight', 'jawForward', 'jawLeft', 'jawOpen',
                'jawRight', 'mouthClose', 'mouthDimpleLeft', 'mouthDimpleRight',
                'mouthFrownLeft', 'mouthFrownRight', 'mouthFunnel', 'mouthLeft',
                'mouthLowerDownLeft', 'mouthLowerDownRight', 'mouthPressLeft',
                'mouthPressRight', 'mouthPucker', 'mouthRight', 'mouthRollLower',
                'mouthRollUpper', 'mouthShrugLower', 'mouthShrugUpper', 'mouthSmileLeft',
                'mouthSmileRight', 'mouthStretchLeft', 'mouthStretchRight',
                'mouthUpperUpLeft', 'mouthUpperUpRight', 'noseSneerLeft',
                'noseSneerRight', 'tongueOut']


def make_region_weight():
    """Deterministic weight init, exactly as RegionWeightedL1Loss.__init__."""
    weight_map = []
    for name in model_bsList:
        if any(key in name for key in ['mouth', 'jaw', 'tongue', 'brow']):
            weight_map.append(0.4)
        elif any(key in name for key in ['eye', 'cheek', 'nose']):
            weight_map.append(0.3)
        else:
            weight_map.append(0.1)
    return jnp.asarray(weight_map, dtype=jnp.float32)


def _interp_linear_time(x, t_out):
    """PyTorch F.interpolate(mode='linear', align_corners=False) along time.

    x: (B, T_in, C) -> (B, t_out, C).  Plain-JAX glue, only used when the
    pred/target lengths differ.
    """
    b, t_in, c = x.shape
    if t_in == t_out:
        return x
    scale = t_in / t_out
    coords = (jnp.arange(t_out, dtype=jnp.float32) + 0.5) * scale - 0.5
    coords = jnp.clip(coords, 0.0, float(t_in - 1))
    lo = jnp.floor(coords).astype(jnp.int32)
    hi = jnp.minimum(lo + 1, t_in - 1)
    frac = (coords - lo.astype(jnp.float32))[None, :, None]
    return x[:, lo, :] * (1.0 - frac) + x[:, hi, :] * frac


def match_length(pred, target):
    t_pred, t_gt = pred.shape[1], target.shape[1]
    if t_pred == t_gt:
        return pred, target
    elif t_pred < t_gt:
        return pred, _interp_linear_time(target, t_pred)
    else:
        return _interp_linear_time(pred, t_gt), target


def _round_up(x, m):
    return ((x + m - 1) // m) * m


def _pick_time_tile(b, t, max_rows=4096, max_tile=512):
    """Time-tile size: multiple of 8, bounded so b*tt rows stay a few MiB."""
    tt = min(max_tile, max(8, _round_up(max(1, max_rows // max(b, 1)), 8)))
    tt = min(tt, _round_up(t, 8))
    return max(tt, 8)


def _emotalk_loss_kernel(pred_ref, tgt_ref, w_ref, out_ref,
                         carry_p_ref, carry_t_ref, carry_d_ref,
                         acc_main_ref, acc_sm_ref, acc_vel_ref,
                         *, t_total, smooth_w, vel_w):
    i = pl.program_id(0)
    nt = pl.num_programs(0)
    b, tt, c = pred_ref.shape

    p = pred_ref[...].astype(jnp.float32)     # (B, TT, C)
    t = tgt_ref[...].astype(jnp.float32)      # (B, TT, C)
    w = w_ref[...].astype(jnp.float32)        # (1, 1,  C) broadcasts

    @pl.when(i == 0)
    def _init():
        acc_main_ref[...] = jnp.zeros_like(acc_main_ref)
        acc_sm_ref[...] = jnp.zeros_like(acc_sm_ref)
        acc_vel_ref[...] = jnp.zeros_like(acc_vel_ref)
        # Neutral carries: the (masked-out) first-row differences become 0.
        carry_p_ref[...] = p[:, 0:1, :]
        carry_t_ref[...] = t[:, 0:1, :]
        carry_d_ref[...] = jnp.zeros_like(carry_d_ref)

    # Global time index of every row in this tile; padded rows are masked.
    row = lax.broadcasted_iota(jnp.int32, (b, tt, c), 1) + i * tt
    in_range = row < t_total

    # First temporal difference, computed once and reused (velocity +
    # smoothness).  The carried rows make cross-tile differences exact.
    p_prev = jnp.concatenate([carry_p_ref[...], p[:, :-1, :]], axis=1)
    t_prev = jnp.concatenate([carry_t_ref[...], t[:, :-1, :]], axis=1)
    d_pred = p - p_prev                               # pred[g]  - pred[g-1]
    d_tgt = t - t_prev
    d_prev = jnp.concatenate([carry_d_ref[...], d_pred[:, :-1, :]], axis=1)

    # Region-weighted L1 (valid for every real frame).
    l1 = jnp.where(in_range, jnp.abs(p - t) * w, 0.0)
    # Velocity MSE terms (valid for global index g in [1, T-1]).
    vd = d_pred - d_tgt
    vel = jnp.where((row >= 1) & in_range, vd * vd, 0.0)
    # Second-difference smoothness: d[g]-d[g-1] = pred[g]-2*pred[g-1]+pred[g-2]
    # (valid for g in [2, T-1]).
    sd = d_pred - d_prev
    sm = jnp.where((row >= 2) & in_range, sd * sd, 0.0)

    # Per-channel partial sums (cheap sublane reductions; lanes kept).
    acc_main_ref[...] += jnp.sum(l1, axis=(0, 1), keepdims=True)
    acc_vel_ref[...] += jnp.sum(vel, axis=(0, 1), keepdims=True)
    acc_sm_ref[...] += jnp.sum(sm, axis=(0, 1), keepdims=True)

    # Carry the halo rows for the next tile.
    carry_p_ref[...] = p[:, tt - 1:tt, :]
    carry_t_ref[...] = t[:, tt - 1:tt, :]
    carry_d_ref[...] = d_pred[:, tt - 1:tt, :]

    @pl.when(i == nt - 1)
    def _finalize():
        # True element counts.  Guarded denominators: for T < 3 (or < 2) the
        # PyTorch mean over an empty slice would be NaN; here we return 0.
        inv_main = 1.0 / float(b * t_total * c)
        inv_vel = 1.0 / float(max(b * (t_total - 1) * c, 1))
        inv_sm = 1.0 / float(max(b * (t_total - 2) * c, 1))
        main = jnp.sum(acc_main_ref[...]) * inv_main
        smooth = jnp.sum(acc_sm_ref[...]) * inv_sm
        vel_m = jnp.sum(acc_vel_ref[...]) * inv_vel
        out_ref[0, 0] = main
        out_ref[0, 1] = smooth
        out_ref[0, 2] = vel_m
        out_ref[0, 3] = main + smooth_w * smooth + vel_w * vel_m


def _emotalk_loss_parts(pred, target, weight_11c, smooth_weight, vel_weight):
    b, t, c = pred.shape
    tt = _pick_time_tile(b, t)
    grid = (pl.cdiv(t, tt),)

    kernel = functools.partial(
        _emotalk_loss_kernel,
        t_total=t, smooth_w=float(smooth_weight), vel_w=float(vel_weight))

    bytes_in = (b * t * c * jnp.dtype(pred.dtype).itemsize
                + b * t * c * jnp.dtype(target.dtype).itemsize
                + 4 * c + 16)
    cost = pl.CostEstimate(flops=10 * b * t * c, transcendentals=0,
                           bytes_accessed=int(bytes_in))

    grid_spec = pltpu.PrefetchScalarGridSpec(
        num_scalar_prefetch=0,
        grid=grid,
        in_specs=[
            pl.BlockSpec((b, tt, c), lambda i: (0, i, 0)),
            pl.BlockSpec((b, tt, c), lambda i: (0, i, 0)),
            pl.BlockSpec((1, 1, c), lambda i: (0, 0, 0)),
        ],
        out_specs=pl.BlockSpec((1, 4), lambda i: (0, 0),
                               memory_space=pltpu.SMEM),
        scratch_shapes=[
            pltpu.VMEM((b, 1, c), jnp.float32),   # carry: prev pred row
            pltpu.VMEM((b, 1, c), jnp.float32),   # carry: prev target row
            pltpu.VMEM((b, 1, c), jnp.float32),   # carry: prev d_pred row
            pltpu.VMEM((1, 1, c), jnp.float32),   # acc: main (per channel)
            pltpu.VMEM((1, 1, c), jnp.float32),   # acc: smooth
            pltpu.VMEM((1, 1, c), jnp.float32),   # acc: velocity
        ],
    )

    out = pl.pallas_call(
        kernel,
        out_shape=jax.ShapeDtypeStruct((1, 4), jnp.float32),
        grid_spec=grid_spec,
        compiler_params=pltpu.CompilerParams(
            # Sequential grid (cross-tile carries + resident accumulators).
            dimension_semantics=("arbitrary",),
            vmem_limit_bytes=32 * 1024 * 1024,
        ),
        cost_estimate=cost,
    )(pred, target, weight_11c)
    return out[0]   # (4,) = [main, smooth, vel, total]


@functools.partial(jax.jit, static_argnames=("smooth_weight", "vel_weight"))
def _emotalk_loss(pred, target, weight_11c, smooth_weight, vel_weight):
    pred, target = match_length(pred, target)
    return _emotalk_loss_parts(pred, target, weight_11c,
                               smooth_weight, vel_weight)


class EmoTalkLoss:
    """JAX/Pallas port of the PyTorch EmoTalkLoss forward pass."""

    def __init__(self, region_weighted=True):
        self.smooth_weight = 0.1
        self.vel_weight = 0.5
        self.region_weighted = region_weighted
        self.weight = make_region_weight() if region_weighted else None

    def __call__(self, pred, target):
        c = pred.shape[-1]
        if self.region_weighted:
            w = self.weight.reshape(1, 1, c).astype(jnp.float32)
        else:
            # nn.L1Loss() == uniform weight of 1.0 under the same kernel.
            w = jnp.ones((1, 1, c), dtype=jnp.float32)

        parts = _emotalk_loss(pred, target, w,
                              self.smooth_weight, self.vel_weight)
        total = parts[3]
        # Logs stay as device scalars (no blocking host sync per step).
        # Call float(...) on them only when actually logging.
        logs = {'main': parts[0], 'smooth': parts[1],
                'vel': parts[2], 'total': total}
        return total, logs


if __name__ == "__main__":
    import numpy as np

    key = jax.random.PRNGKey(0)
    k1, k2 = jax.random.split(key)
    B, T_pred, T_gt, C = 2, 8, 12, 52     # C must be 52 (blendshape count)
    pred = jax.random.normal(k1, (B, T_pred, C), dtype=jnp.float32)
    target = jax.random.normal(k2, (B, T_gt, C), dtype=jnp.float32)

    loss_fn = EmoTalkLoss(region_weighted=True)
    total, logs = loss_fn(pred, target)
    jax.block_until_ready(total)

    # Pure-JAX reference of the same forward pass (correctness gate).
    p_m, t_m = match_length(pred, target)
    w_ref = make_region_weight().reshape(1, 1, C)
    ref_main = jnp.mean(jnp.abs(p_m - t_m) * w_ref)
    ref_sm = jnp.mean((p_m[:, 2:] - 2.0 * p_m[:, 1:-1] + p_m[:, :-2]) ** 2)
    vel_p = p_m[:, 1:] - p_m[:, :-1]
    vel_t = t_m[:, 1:] - t_m[:, :-1]
    ref_vel = jnp.mean((vel_p - vel_t) ** 2)
    ref_total = ref_main + 0.1 * ref_sm + 0.5 * ref_vel

    np.testing.assert_allclose(np.asarray(logs['main']), np.asarray(ref_main),
                               rtol=1e-4, atol=1e-5)
    np.testing.assert_allclose(np.asarray(logs['smooth']), np.asarray(ref_sm),
                               rtol=1e-4, atol=1e-5)
    np.testing.assert_allclose(np.asarray(logs['vel']), np.asarray(ref_vel),
                               rtol=1e-4, atol=1e-5)
    np.testing.assert_allclose(np.asarray(total), np.asarray(ref_total),
                               rtol=1e-4, atol=1e-5)
    print("KERNEL_OK")
</pallas_src>

<mosaic_0001>
module attributes {stable_mosaic.version = 11 : i64} {
  func.func @_emotalk_loss_kernel(%arg0: i32, %arg1: memref<2x8x52xf32, #tpu.memory_space<vmem>>, %arg2: memref<2x8x52xf32, #tpu.memory_space<vmem>>, %arg3: memref<1x1x52xf32, #tpu.memory_space<vmem>>, %arg4: memref<1x4xf32, #tpu.memory_space<smem>>, %arg5: memref<2x1x52xf32, #tpu.memory_space<vmem>>, %arg6: memref<2x1x52xf32, #tpu.memory_space<vmem>>, %arg7: memref<2x1x52xf32, #tpu.memory_space<vmem>>, %arg8: memref<1x1x52xf32, #tpu.memory_space<vmem>>, %arg9: memref<1x1x52xf32, #tpu.memory_space<vmem>>, %arg10: memref<1x1x52xf32, #tpu.memory_space<vmem>>) attributes {dimension_semantics = [#tpu.dimension_semantics<arbitrary>], iteration_bounds = array<i64: 1>, scalar_prefetch = 0 : i64, scratch_operands = 6 : i64, tpu.core_type = #tpu.core_type<tc>, window_params = [{transform_indices = @transform_0, window_bounds = array<i64: 2, 8, 52>}, {transform_indices = @transform_1, window_bounds = array<i64: 2, 8, 52>}, {pipeline_mode = #tpu.pipeline_mode<synchronous>, transform_indices = @transform_2, window_bounds = array<i64: 1, 1, 52>}, {transform_indices = @transform_3, window_bounds = array<i64: 1, 4>}]} {
    %c0 = arith.constant 0 : index
    %c0_0 = arith.constant 0 : index
    %c0_1 = arith.constant 0 : index
    %0 = vector.load %arg1[%c0, %c0_0, %c0_1] : memref<2x8x52xf32, #tpu.memory_space<vmem>>, vector<2x8x52xf32>
    %c0_2 = arith.constant 0 : index
    %c0_3 = arith.constant 0 : index
    %c0_4 = arith.constant 0 : index
    %1 = vector.load %arg2[%c0_2, %c0_3, %c0_4] : memref<2x8x52xf32, #tpu.memory_space<vmem>>, vector<2x8x52xf32>
    %c0_5 = arith.constant 0 : index
    %c0_6 = arith.constant 0 : index
    %c0_7 = arith.constant 0 : index
    %2 = vector.load %arg3[%c0_5, %c0_6, %c0_7] : memref<1x1x52xf32, #tpu.memory_space<vmem>>, vector<1x1x52xf32>
    %c0_i32 = arith.constant 0 : i32
    %3 = arith.cmpi eq, %arg0, %c0_i32 : i32
    %4 = arith.extui %3 : i1 to i32
    %c0_i32_8 = arith.constant 0 : i32
    %5 = arith.cmpi ne, %4, %c0_i32_8 : i32
    scf.if %5 {
      %cst_53 = arith.constant 0.000000e+00 : f32
      %67 = vector.broadcast %cst_53 : f32 to vector<1x1x52xf32>
      %c0_54 = arith.constant 0 : index
      %c0_55 = arith.constant 0 : index
      %c0_56 = arith.constant 0 : index
      %68 = vector.load %arg8[%c0_54, %c0_55, %c0_56] : memref<1x1x52xf32, #tpu.memory_space<vmem>>, vector<1x1x52xf32>
      tpu.vector_store %arg8[%c0_54, %c0_55, %c0_56], %67 {strides = array<i32>} : memref<1x1x52xf32, #tpu.memory_space<vmem>>, vector<1x1x52xf32>,
      %cst_57 = arith.constant 0.000000e+00 : f32
      %69 = vector.broadcast %cst_57 : f32 to vector<1x1x52xf32>
      %c0_58 = arith.constant 0 : index
      %c0_59 = arith.constant 0 : index
      %c0_60 = arith.constant 0 : index
      %70 = vector.load %arg9[%c0_58, %c0_59, %c0_60] : memref<1x1x52xf32, #tpu.memory_space<vmem>>, vector<1x1x52xf32>
      tpu.vector_store %arg9[%c0_58, %c0_59, %c0_60], %69 {strides = array<i32>} : memref<1x1x52xf32, #tpu.memory_space<vmem>>, vector<1x1x52xf32>,
      %cst_61 = arith.constant 0.000000e+00 : f32
      %71 = vector.broadcast %cst_61 : f32 to vector<1x1x52xf32>
      %c0_62 = arith.constant 0 : index
      %c0_63 = arith.constant 0 : index
      %c0_64 = arith.constant 0 : index
      %72 = vector.load %arg10[%c0_62, %c0_63, %c0_64] : memref<1x1x52xf32, #tpu.memory_space<vmem>>, vector<1x1x52xf32>
      tpu.vector_store %arg10[%c0_62, %c0_63, %c0_64], %71 {strides = array<i32>} : memref<1x1x52xf32, #tpu.memory_space<vmem>>, vector<1x1x52xf32>,
      %73 = vector.extract_strided_slice %0 {offsets = [0, 0, 0], sizes = [2, 1, 52], strides = [1, 1, 1]} : vector<2x8x52xf32> to vector<2x1x52xf32>
      %c0_65 = arith.constant 0 : index
      %c0_66 = arith.constant 0 : index
      %c0_67 = arith.constant 0 : index
      %74 = vector.load %arg5[%c0_65, %c0_66, %c0_67] : memref<2x1x52xf32, #tpu.memory_space<vmem>>, vector<2x1x52xf32>
      tpu.vector_store %arg5[%c0_65, %c0_66, %c0_67], %73 {strides = array<i32>} : memref<2x1x52xf32, #tpu.memory_space<vmem>>, vector<2x1x52xf32>,
      %75 = vector.extract_strided_slice %1 {offsets = [0, 0, 0], sizes = [2, 1, 52], strides = [1, 1, 1]} : vector<2x8x52xf32> to vector<2x1x52xf32>
      %c0_68 = arith.constant 0 : index
      %c0_69 = arith.constant 0 : index
      %c0_70 = arith.constant 0 : index
      %76 = vector.load %arg6[%c0_68, %c0_69, %c0_70] : memref<2x1x52xf32, #tpu.memory_space<vmem>>, vector<2x1x52xf32>
      tpu.vector_store %arg6[%c0_68, %c0_69, %c0_70], %75 {strides = array<i32>} : memref<2x1x52xf32, #tpu.memory_space<vmem>>, vector<2x1x52xf32>,
      %cst_71 = arith.constant 0.000000e+00 : f32
      %77 = vector.broadcast %cst_71 : f32 to vector<2x1x52xf32>
      %c0_72 = arith.constant 0 : index
      %c0_73 = arith.constant 0 : index
      %c0_74 = arith.constant 0 : index
      %78 = vector.load %arg7[%c0_72, %c0_73, %c0_74] : memref<2x1x52xf32, #tpu.memory_space<vmem>>, vector<2x1x52xf32>
      tpu.vector_store %arg7[%c0_72, %c0_73, %c0_74], %77 {strides = array<i32>} : memref<2x1x52xf32, #tpu.memory_space<vmem>>, vector<2x1x52xf32>,
    } else {
    }
    %6 = tpu.iota {dimensions = array<i32: 1>} : vector<2x8x52xi32>
    %c8_i32 = arith.constant 8 : i32
    %7 = arith.muli %arg0, %c8_i32 : i32
    %8 = vector.broadcast %7 : i32 to vector<2x8x52xi32>
    %9 = arith.addi %6, %8 : vector<2x8x52xi32>
    %c8_i32_9 = arith.constant 8 : i32
    %10 = vector.broadcast %c8_i32_9 : i32 to vector<2x8x52xi32>
    %11 = arith.cmpi slt, %9, %10 : vector<2x8x52xi32>
    %c0_10 = arith.constant 0 : index
    %c0_11 = arith.constant 0 : index
    %c0_12 = arith.constant 0 : index
    %12 = vector.load %arg5[%c0_10, %c0_11, %c0_12] : memref<2x1x52xf32, #tpu.memory_space<vmem>>, vector<2x1x52xf32>
    %13 = vector.extract_strided_slice %0 {offsets = [0, 0, 0], sizes = [2, 7, 52], strides = [1, 1, 1]} : vector<2x8x52xf32> to vector<2x7x52xf32>
    %14 = tpu.concatenate %12, %13 in 1 : vector<2x1x52xf32>, vector<2x7x52xf32> -> vector<2x8x52xf32>
    %c0_13 = arith.constant 0 : index
    %c0_14 = arith.constant 0 : index
    %c0_15 = arith.constant 0 : index
    %15 = vector.load %arg6[%c0_13, %c0_14, %c0_15] : memref<2x1x52xf32, #tpu.memory_space<vmem>>, vector<2x1x52xf32>
    %16 = vector.extract_strided_slice %1 {offsets = [0, 0, 0], sizes = [2, 7, 52], strides = [1, 1, 1]} : vector<2x8x52xf32> to vector<2x7x52xf32>
    %17 = tpu.concatenate %15, %16 in 1 : vector<2x1x52xf32>, vector<2x7x52xf32> -> vector<2x8x52xf32>
    %18 = arith.subf %0, %14 : vector<2x8x52xf32>
    %19 = arith.subf %1, %17 : vector<2x8x52xf32>
    %c0_16 = arith.constant 0 : index
    %c0_17 = arith.constant 0 : index
    %c0_18 = arith.constant 0 : index
    %20 = vector.load %arg7[%c0_16, %c0_17, %c0_18] : memref<2x1x52xf32, #tpu.memory_space<vmem>>, vector<2x1x52xf32>
    %21 = vector.extract_strided_slice %18 {offsets = [0, 0, 0], sizes = [2, 7, 52], strides = [1, 1, 1]} : vector<2x8x52xf32> to vector<2x7x52xf32>
    %22 = tpu.concatenate %20, %21 in 1 : vector<2x1x52xf32>, vector<2x7x52xf32> -> vector<2x8x52xf32>
    %23 = arith.subf %0, %1 : vector<2x8x52xf32>
    %24 = math.absf %23 : vector<2x8x52xf32>
    %25 = vector.broadcast %2 : vector<1x1x52xf32> to vector<2x8x52xf32>
    %26 = arith.mulf %24, %25 : vector<2x8x52xf32>
    %cst = arith.constant 0.000000e+00 : f32
    %27 = vector.broadcast %cst : f32 to vector<2x8x52xf32>
    %28 = arith.select %11, %26, %27 : vector<2x8x52xi1>, vector<2x8x52xf32>
    %29 = arith.subf %18, %19 : vector<2x8x52xf32>
    %c1_i32 = arith.constant 1 : i32
    %30 = vector.broadcast %c1_i32 : i32 to vector<2x8x52xi32>
    %31 = arith.cmpi sge, %9, %30 : vector<2x8x52xi32>
    %32 = arith.andi %31, %11 : vector<2x8x52xi1>
    %33 = arith.mulf %29, %29 : vector<2x8x52xf32>
    %cst_19 = arith.constant 0.000000e+00 : f32
    %34 = vector.broadcast %cst_19 : f32 to vector<2x8x52xf32>
    %35 = arith.select %32, %33, %34 : vector<2x8x52xi1>, vector<2x8x52xf32>
    %36 = arith.subf %18, %22 : vector<2x8x52xf32>
    %c2_i32 = arith.constant 2 : i32
    %37 = vector.broadcast %c2_i32 : i32 to vector<2x8x52xi32>
    %38 = arith.cmpi sge, %9, %37 : vector<2x8x52xi32>
    %39 = arith.andi %38, %11 : vector<2x8x52xi1>
    %40 = arith.mulf %36, %36 : vector<2x8x52xf32>
    %cst_20 = arith.constant 0.000000e+00 : f32
    %41 = vector.broadcast %cst_20 : f32 to vector<2x8x52xf32>
    %42 = arith.select %39, %40, %41 : vector<2x8x52xi1>, vector<2x8x52xf32>
    %c0_21 = arith.constant 0 : index
    %c0_22 = arith.constant 0 : index
    %c0_23 = arith.constant 0 : index
    %43 = vector.load %arg8[%c0_21, %c0_22, %c0_23] : memref<1x1x52xf32, #tpu.memory_space<vmem>>, vector<1x1x52xf32>
    %cst_24 = arith.constant dense<0.000000e+00> : vector<52xf32>
    %44 = vector.multi_reduction <add>, %28, %cst_24 [0, 1] : vector<2x8x52xf32> to vector<52xf32>
    %45 = vector.shape_cast %44 : vector<52xf32> to vector<1x1x52xf32>
    %46 = arith.addf %43, %45 : vector<1x1x52xf32>
    %c0_25 = arith.constant 0 : index
    %c0_26 = arith.constant 0 : index
    %c0_27 = arith.constant 0 : index
    %47 = vector.load %arg8[%c0_25, %c0_26, %c0_27] : memref<1x1x52xf32, #tpu.memory_space<vmem>>, vector<1x1x52xf32>
    tpu.vector_store %arg8[%c0_25, %c0_26, %c0_27], %46 {strides = array<i32>} : memref<1x1x52xf32, #tpu.memory_space<vmem>>, vector<1x1x52xf32>,
    %c0_28 = arith.constant 0 : index
    %c0_29 = arith.constant 0 : index
    %c0_30 = arith.constant 0 : index
    %48 = vector.load %arg10[%c0_28, %c0_29, %c0_30] : memref<1x1x52xf32, #tpu.memory_space<vmem>>, vector<1x1x52xf32>
    %cst_31 = arith.constant dense<0.000000e+00> : vector<52xf32>
    %49 = vector.multi_reduction <add>, %35, %cst_31 [0, 1] : vector<2x8x52xf32> to vector<52xf32>
    %50 = vector.shape_cast %49 : vector<52xf32> to vector<1x1x52xf32>
    %51 = arith.addf %48, %50 : vector<1x1x52xf32>
    %c0_32 = arith.constant 0 : index
    %c0_33 = arith.constant 0 : index
    %c0_34 = arith.constant 0 : index
    %52 = vector.load %arg10[%c0_32, %c0_33, %c0_34] : memref<1x1x52xf32, #tpu.memory_space<vmem>>, vector<1x1x52xf32>
    tpu.vector_store %arg10[%c0_32, %c0_33, %c0_34], %51 {strides = array<i32>} : memref<1x1x52xf32, #tpu.memory_space<vmem>>, vector<1x1x52xf32>,
    %c0_35 = arith.constant 0 : index
    %c0_36 = arith.constant 0 : index
    %c0_37 = arith.constant 0 : index
    %53 = vector.load %arg9[%c0_35, %c0_36, %c0_37] : memref<1x1x52xf32, #tpu.memory_space<vmem>>, vector<1x1x52xf32>
    %cst_38 = arith.constant dense<0.000000e+00> : vector<52xf32>
    %54 = vector.multi_reduction <add>, %42, %cst_38 [0, 1] : vector<2x8x52xf32> to vector<52xf32>
    %55 = vector.shape_cast %54 : vector<52xf32> to vector<1x1x52xf32>
    %56 = arith.addf %53, %55 : vector<1x1x52xf32>
    %c0_39 = arith.constant 0 : index
    %c0_40 = arith.constant 0 : index
    %c0_41 = arith.constant 0 : index
    %57 = vector.load %arg9[%c0_39, %c0_40, %c0_41] : memref<1x1x52xf32, #tpu.memory_space<vmem>>, vector<1x1x52xf32>
    tpu.vector_store %arg9[%c0_39, %c0_40, %c0_41], %56 {strides = array<i32>} : memref<1x1x52xf32, #tpu.memory_space<vmem>>, vector<1x1x52xf32>,
    %58 = vector.extract_strided_slice %0 {offsets = [0, 7, 0], sizes = [2, 1, 52], strides = [1, 1, 1]} : vector<2x8x52xf32> to vector<2x1x52xf32>
    %c0_42 = arith.constant 0 : index
    %c0_43 = arith.constant 0 : index
    %c0_44 = arith.constant 0 : index
    %59 = vector.load %arg5[%c0_42, %c0_43, %c0_44] : memref<2x1x52xf32, #tpu.memory_space<vmem>>, vector<2x1x52xf32>
    tpu.vector_store %arg5[%c0_42, %c0_43, %c0_44], %58 {strides = array<i32>} : memref<2x1x52xf32, #tpu.memory_space<vmem>>, vector<2x1x52xf32>,
    %60 = vector.extract_strided_slice %1 {offsets = [0, 7, 0], sizes = [2, 1, 52], strides = [1, 1, 1]} : vector<2x8x52xf32> to vector<2x1x52xf32>
    %c0_45 = arith.constant 0 : index
    %c0_46 = arith.constant 0 : index
    %c0_47 = arith.constant 0 : index
    %61 = vector.load %arg6[%c0_45, %c0_46, %c0_47] : memref<2x1x52xf32, #tpu.memory_space<vmem>>, vector<2x1x52xf32>
    tpu.vector_store %arg6[%c0_45, %c0_46, %c0_47], %60 {strides = array<i32>} : memref<2x1x52xf32, #tpu.memory_space<vmem>>, vector<2x1x52xf32>,
    %62 = vector.extract_strided_slice %18 {offsets = [0, 7, 0], sizes = [2, 1, 52], strides = [1, 1, 1]} : vector<2x8x52xf32> to vector<2x1x52xf32>
    %c0_48 = arith.constant 0 : index
    %c0_49 = arith.constant 0 : index
    %c0_50 = arith.constant 0 : index
    %63 = vector.load %arg7[%c0_48, %c0_49, %c0_50] : memref<2x1x52xf32, #tpu.memory_space<vmem>>, vector<2x1x52xf32>
    tpu.vector_store %arg7[%c0_48, %c0_49, %c0_50], %62 {strides = array<i32>} : memref<2x1x52xf32, #tpu.memory_space<vmem>>, vector<2x1x52xf32>,
    %c0_i32_51 = arith.constant 0 : i32
    %64 = arith.cmpi eq, %arg0, %c0_i32_51 : i32
    %65 = arith.extui %64 : i1 to i32
    %c0_i32_52 = arith.constant 0 : i32
    %66 = arith.cmpi ne, %65, %c0_i32_52 : i32
    scf.if %66 {
      %c0_53 = arith.constant 0 : index
      %c0_54 = arith.constant 0 : index
      %c0_55 = arith.constant 0 : index
      %67 = vector.load %arg8[%c0_53, %c0_54, %c0_55] : memref<1x1x52xf32, #tpu.memory_space<vmem>>, vector<1x1x52xf32>
      %68 = vector.shape_cast %67 : vector<1x1x52xf32> to vector<1x1x1x52xf32>
      %cst_56 = arith.constant dense<0.000000e+00> : vector<1xf32>
      %69 = vector.multi_reduction <add>, %68, %cst_56 [1, 2, 3] : vector<1x1x1x52xf32> to vector<1xf32>
      %70 = vector.shape_cast %69 : vector<1xf32> to vector<1x1x1x1xf32>
      %71 = vector.extract %70[0, 0, 0, 0] : f32 from vector<1x1x1x1xf32>
      %cst_57 = arith.constant 0.00120192312 : f32
      %72 = arith.mulf %71, %cst_57 : f32
      %c0_58 = arith.constant 0 : index
      %c0_59 = arith.constant 0 : index
      %c0_60 = arith.constant 0 : index
      %73 = vector.load %arg9[%c0_58, %c0_59, %c0_60] : memref<1x1x52xf32, #tpu.memory_space<vmem>>, vector<1x1x52xf32>
      %74 = vector.shape_cast %73 : vector<1x1x52xf32> to vector<1x1x1x52xf32>
      %cst_61 = arith.constant dense<0.000000e+00> : vector<1xf32>
      %75 = vector.multi_reduction <add>, %74, %cst_61 [1, 2, 3] : vector<1x1x1x52xf32> to vector<1xf32>
      %76 = vector.shape_cast %75 : vector<1xf32> to vector<1x1x1x1xf32>
      %77 = vector.extract %76[0, 0, 0, 0] : f32 from vector<1x1x1x1xf32>
      %cst_62 = arith.constant 0.00160256412 : f32
      %78 = arith.mulf %77, %cst_62 : f32
      %c0_63 = arith.constant 0 : index
      %c0_64 = arith.constant 0 : index
      %c0_65 = arith.constant 0 : index
      %79 = vector.load %arg10[%c0_63, %c0_64, %c0_65] : memref<1x1x52xf32, #tpu.memory_space<vmem>>, vector<1x1x52xf32>
      %80 = vector.shape_cast %79 : vector<1x1x52xf32> to vector<1x1x1x52xf32>
      %cst_66 = arith.constant dense<0.000000e+00> : vector<1xf32>
      %81 = vector.multi_reduction <add>, %80, %cst_66 [1, 2, 3] : vector<1x1x1x52xf32> to vector<1xf32>
      %82 = vector.shape_cast %81 : vector<1xf32> to vector<1x1x1x1xf32>
      %83 = vector.extract %82[0, 0, 0, 0] : f32 from vector<1x1x1x1xf32>
      %cst_67 = arith.constant 0.00137362641 : f32
      %84 = arith.mulf %83, %cst_67 : f32
      %c0_68 = arith.constant 0 : index
      %c0_69 = arith.constant 0 : index
      %85 = memref.load %arg4[%c0_68, %c0_69] : memref<1x4xf32, #tpu.memory_space<smem>>
      memref.store %72, %arg4[%c0_68, %c0_69] : memref<1x4xf32, #tpu.memory_space<smem>>
      %c0_70 = arith.constant 0 : index
      %c1 = arith.constant 1 : index
      %86 = memref.load %arg4[%c0_70, %c1] : memref<1x4xf32, #tpu.memory_space<smem>>
      memref.store %78, %arg4[%c0_70, %c1] : memref<1x4xf32, #tpu.memory_space<smem>>
      %c0_71 = arith.constant 0 : index
      %c2 = arith.constant 2 : index
      %87 = memref.load %arg4[%c0_71, %c2] : memref<1x4xf32, #tpu.memory_space<smem>>
      memref.store %84, %arg4[%c0_71, %c2] : memref<1x4xf32, #tpu.memory_space<smem>>
      %cst_72 = arith.constant 1.000000e-01 : f32
      %88 = arith.mulf %cst_72, %78 : f32
      %89 = arith.addf %72, %88 : f32
      %cst_73 = arith.constant 5.000000e-01 : f32
      %90 = arith.mulf %cst_73, %84 : f32
      %91 = arith.addf %89, %90 : f32
      %c0_74 = arith.constant 0 : index
      %c3 = arith.constant 3 : index
      %92 = memref.load %arg4[%c0_74, %c3] : memref<1x4xf32, #tpu.memory_space<smem>>
      memref.store %91, %arg4[%c0_74, %c3] : memref<1x4xf32, #tpu.memory_space<smem>>
    } else {
    }
    return
  }
  func.func @transform_0(%arg0: i32) -> (i32, i32, i32) {
    %c0_i32 = arith.constant 0 : i32
    %c0_i32_0 = arith.constant 0 : i32
    %c0_i32_1 = arith.constant 0 : i32
    return %c0_i32, %arg0, %c0_i32_0 : i32, i32, i32
  }
  func.func @transform_1(%arg0: i32) -> (i32, i32, i32) {
    %c0_i32 = arith.constant 0 : i32
    %c0_i32_0 = arith.constant 0 : i32
    %c0_i32_1 = arith.constant 0 : i32
    return %c0_i32, %arg0, %c0_i32_0 : i32, i32, i32
  }
  func.func @transform_2(%arg0: i32) -> (i32, i32, i32) {
    %c0_i32 = arith.constant 0 : i32
    %c0_i32_0 = arith.constant 0 : i32
    %c0_i32_1 = arith.constant 0 : i32
    %c0_i32_2 = arith.constant 0 : i32
    return %c0_i32, %c0_i32_0, %c0_i32_1 : i32, i32, i32
  }
  func.func @transform_3(%arg0: i32) -> (i32, i32) {
    %c0_i32 = arith.constant 0 : i32
    %c0_i32_0 = arith.constant 0 : i32
    %c0_i32_1 = arith.constant 0 : i32
    return %c0_i32, %c0_i32_0 : i32, i32
  }
}

</mosaic_0001>

<bundles_post_ra>
// kernel: _emotalk_loss.1
= control target key start
LH: loop header
LB: loop body
LE: loop exit
PB: predicated region body
PF: predicated region fallthrough
CT: control target
= control target key end

     0   :  { %vm24_vm0 = vcmask 417792   ;;  %v235_v4 = vmov 0.0   ;;  %s317_s0 = inlined_call_operand.vmem [shape: f32[2,8,52], index: 0, kind: input, shape index: {}]   ;;  %s318_s1 = inlined_call_operand.vmem [shape: f32[2,8,52], index: 1, kind: input, shape index: {}]   ;;  %s319_s2 = inlined_call_operand.vmem [shape: f32[1,1,52], index: 2, kind: input, shape index: {}]   ;;  %s320_s3 = inlined_call_operand.hbm [shape: f32[1,4], index: 3, kind: output, shape index: {}]  }
   0x1   :  { %v15_v0 = vld [vmem:[%s317_s0] sm:$0xff]  ;;  %v16_v1 = vld [vmem:[%s317_s0 + $0x8] sm:$0xff]  ;;  %25 = vst.msk [vmem:[#allocation5] sm:$0x1] %vm24_vm0, %v235_v4  ;;  %32 = vst.msk [vmem:[#allocation4] sm:$0x1] %vm24_vm0, %v235_v4 }
   0x2   :  { %v17_v2 = vld [vmem:[%s318_s1] sm:$0xff]  ;;  %v18_v3 = vld [vmem:[%s318_s1 + $0x8] sm:$0xff]  ;;  %29 = vst.msk [vmem:[#allocation2 + $0x1] sm:$0x1] %vm24_vm0, %v16_v1  ;;  %33 = vst.msk [vmem:[#allocation4 + $0x1] sm:$0x1] %vm24_vm0, %v235_v4 }
   0x3   :  { %v75_v5 = vsub.f32 %v15_v0, %v17_v2  ;;  %28 = vst.msk [vmem:[#allocation2] sm:$0x1] %vm24_vm0, %v15_v0  ;;  %26 = vst.msk [vmem:[#allocation6] sm:$0x1] %vm24_vm0, %v235_v4  ;;  %v214_v6 = vld [vmem:[%s319_s2] ss:$0 sm:$0xff]  ;;  %v76_v7 = vsub.f32 %v16_v1, %v18_v3 }
   0x4   :  { %27 = vst.msk [vmem:[#allocation7] sm:$0x1] %vm24_vm0, %v235_v4  ;;  %30 = vst.msk [vmem:[#allocation3] sm:$0x1] %vm24_vm0, %v17_v2 }
   0x5   :  { %31 = vst.msk [vmem:[#allocation3 + $0x1] sm:$0x1] %vm24_vm0, %v18_v3 }
   0x6   :  { %8 = vsyncpa [#allocation9], 0  ;;  %v77_v8 = vand.u32 2147483647, %v75_v5  ;;  %v78_v9 = vand.u32 2147483647, %v76_v7  ;;  %v34_v15 = vlaneseq }
   0x7   :  { %vm106_vm1 = vcmask 424960   ;;  %v45_v10 = vrot.slane %v16_v1, 7  ;;  %vm48_vm2 = vcmask 1040384   ;;  %vm143_vm3 = vcmask 424967   ;;  %s223_s4 = scalar_lea.hbm %s320_s3, 16 }
   0x8   :  { %v85_v11 = vmul.f32 %v214_v6, %v77_v8  ;;  %v86_v12 = vmul.f32 %v214_v6, %v78_v9  ;;  %v44_v13 = vrot.slane %v15_v0, 7  ;;  %v55_v16 = vrot.slane %v17_v2, 7  ;;  %v65_v32 = vld [vmem:[#allocation4] sm:$0x1]  ;;  %v105_v60 = vld [vmem:[#allocation5] sm:$0x1]  ;;  %p224_p0 = scmp.ne.s32.totalorder %s320_s3, %s223_s4  ;;  %p227_p1 = scmp.lt.u32.totalorder %s223_s4, %s320_s3 }
   0x9   :  { %v56_v17 = vrot.slane %v18_v3, 7  ;;  %v41_v18 = vld [vmem:[#allocation2 + $0x1] sm:$0x1]  ;;  %v66_v27 = vld [vmem:[#allocation4 + $0x1] sm:$0x1]  ;;  %v35_v29 = vshrl.u32 %v34_v15, 7 }
   0xa   :  { %v107_v14 = vsel %vm106_vm1, %v85_v11, 0.0  ;;  %v50_v19 = vsel %vm48_vm2, %v41_v18, %v45_v10  ;;  %v108_v20 = vsel %vm106_vm1, %v86_v12, 0.0  ;;  %145 = vst.msk [vmem:[#allocation2 - $0x6] sm:$0x80] %vm143_vm3, %v16_v1  ;;  %v40_v21 = vld [vmem:[#allocation2] sm:$0x1]  ;;  %p229_p2 = pnand %p227_p1, %p224_p0 }
   0xb   :  { %v62_v22 = vsub.f32 %v16_v1, %v50_v19  ;;  %v109_v23 = vadd.f32 %v108_v20, %v107_v14  ;;  %v49_v24 = vsel %vm48_vm2, %v40_v21, %v44_v13  ;;  %144 = vst.msk [vmem:[#allocation2 - $0x7] sm:$0x80] %vm143_vm3, %v15_v0  ;;  %v51_v25 = vld [vmem:[#allocation3] sm:$0x1]  ;;  %vm91_vm4 = vcmp.ge.s32.totalorder %v35_v29, 1 }
   0xc   :  { %v52_v26 = vld [vmem:[#allocation3 + $0x1] sm:$0x1]  ;;  %v61_v28 = vsub.f32 %v15_v0, %v49_v24  ;;  %v59_v30 = vsel %vm48_vm2, %v51_v25, %v55_v16  ;;  %146 = vst.msk [vmem:[#allocation3 - $0x7] sm:$0x80] %vm143_vm3, %v17_v2  ;;  %vm99_vm5 = vcmp.ge.s32.totalorder %v35_v29, 2 }
   0xd   :  { %v60_v31 = vsel %vm48_vm2, %v52_v26, %v56_v17  ;;  %147 = vst.msk [vmem:[#allocation3 - $0x6] sm:$0x80] %vm143_vm3, %v18_v3  ;;  %v110_v33 = vrot.slane %v109_v23, 4  ;;  %149 = vst.msk [vmem:[#allocation4 - $0x6] sm:$0x80] %vm143_vm3, %v62_v22  ;;  %v63_v34 = vsub.f32 %v17_v2, %v59_v30  ;;  %v70_v36 = vrot.slane %v62_v22, 7 }
   0xe   :  { %v64_v35 = vsub.f32 %v18_v3, %v60_v31  ;;  %148 = vst.msk [vmem:[#allocation4 - $0x7] sm:$0x80] %vm143_vm3, %v61_v28  ;;  %v69_v37 = vrot.slane %v61_v28, 7  ;;  %v119_v10 = vld [vmem:[#allocation7] sm:$0x1] }
   0xf   :  { %v111_v38 = vadd.f32 %v110_v33, %v109_v23  ;;  %v89_v39 = vsub.f32 %v61_v28, %v63_v34  ;;  %v74_v41 = vsel %vm48_vm2, %v66_v27, %v70_v36  ;;  %v131_v14 = vld [vmem:[#allocation6] sm:$0x1] }
  0x10   :  { %v90_v40 = vsub.f32 %v62_v22, %v64_v35  ;;  %v73_v42 = vsel %vm48_vm2, %v65_v32, %v69_v37  ;;  %v98_v43 = vsub.f32 %v62_v22, %v74_v41 }
  0x11   :  { %v112_v44 = vrot.slane %v111_v38, 2  ;;  %v93_v45 = vmul.f32 %v89_v39, %v89_v39  ;;  %v97_v47 = vsub.f32 %v61_v28, %v73_v42 }
  0x12   :  { %v94_v46 = vmul.f32 %v90_v40, %v90_v40  ;;  %v102_v48 = vmul.f32 %v98_v43, %v98_v43 }
  0x13   :  { %v113_v49 = vadd.f32 %v112_v44, %v111_v38  ;;  %v95_v50 = vsel %vm91_vm4, %v93_v45, 0.0  ;;  %v101_v52 = vmul.f32 %v97_v47, %v97_v47 }
  0x14   :  { %v96_v51 = vsel %vm91_vm4, %v94_v46, 0.0  ;;  %v120_v53 = vsel %vm106_vm1, %v95_v50, 0.0  ;;  %v104_v55 = vsel %vm99_vm5, %v102_v48, 0.0 }
  0x15   :  { %v121_v54 = vsel %vm106_vm1, %v96_v51, 0.0  ;;  %v114_v56 = vrot.slane %v113_v49, 1  ;;  %v103_v58 = vsel %vm99_vm5, %v101_v52, 0.0  ;;  %v133_v59 = vsel %vm106_vm1, %v104_v55, 0.0 }
  0x16   :  { %v122_v57 = vadd.f32 %v121_v54, %v120_v53  ;;  %v132_v61 = vsel %vm106_vm1, %v103_v58, 0.0 }
  0x17   :  { %v115_v62 = vadd.f32 %v114_v56, %v113_v49  ;;  %v134_v0 = vadd.f32 %v133_v59, %v132_v61 }
  0x18   :  { %v123_v63 = vrot.slane %v122_v57, 4 }
  0x19   :  { %v116_v1 = vadd.f32 %v115_v62, %v105_v60  ;;  %v135_v3 = vrot.slane %v134_v0, 4 }
  0x1a   :  { %v124_v2 = vadd.f32 %v123_v63, %v122_v57 }
  0x1b   :  { %118 = vst.msk [vmem:[#allocation5] sm:$0x1] %vm24_vm0, %v116_v1  ;;  %v136_v5 = vadd.f32 %v135_v3, %v134_v0 }
  0x1c   :  { %v125_v4 = vrot.slane %v124_v2, 2 }
  0x1d   :  { %v137_v7 = vrot.slane %v136_v5, 2 }
  0x1e   :  { %v126_v6 = vadd.f32 %v125_v4, %v124_v2 }
  0x1f   :  { %v138_v9 = vadd.f32 %v137_v7, %v136_v5 }
  0x20   :  { %v127_v8 = vrot.slane %v126_v6, 1 }
  0x21   :  { %v139_v12 = vrot.slane %v138_v9, 1 }
  0x22   :  { %v128_v11 = vadd.f32 %v127_v8, %v126_v6  ;;  %v153_v13 = vld [vmem:[#allocation5] sm:$0x1] }
  0x23   :  { %v154_v15 = vsel %vm24_vm0, %v153_v13, 0.0  ;;  %v140_v17 = vadd.f32 %v139_v12, %v138_v9 }
  0x24   :  { %v129_v16 = vadd.f32 %v128_v11, %v119_v10  ;;  %155 = vadd.xlane.f32.xlu0 %v154_v15 }
  0x25   :  { %v141_v18 = vadd.f32 %v140_v17, %v131_v14 }
  0x26   :  { %130 = vst.msk [vmem:[#allocation7] sm:$0x1] %vm24_vm0, %v129_v16 }
  0x27   :  { %142 = vst.msk [vmem:[#allocation6] sm:$0x1] %vm24_vm0, %v141_v18 }
  0x2d   :  { %v177_v19 = vld [vmem:[#allocation7] sm:$0x1] }
  0x2e   :  { %v178_v20 = vsel %vm24_vm0, %v177_v19, 0.0  ;;  %v165_v21 = vld [vmem:[#allocation6] sm:$0x1] }
  0x2f   :  { %179 = vadd.xlane.f32.xlu1 %v178_v20  ;;  %v166_v22 = vsel %vm24_vm0, %v165_v21, 0.0 }
  0x30   :  { %167 = vadd.xlane.f32.xlu0 %v166_v22 }
  0xb1   :  { %v156_v23 = vpop.xlane.xlu0 %155 }
  0xb2   :  { %v157_v24 = vrot.slane %v156_v23, 4 }
  0xb4   :  { %v158_v25 = vadd.f32 %v157_v24, %v156_v23 }
  0xb6   :  { %v159_v26 = vrot.slane %v158_v25, 2 }
  0xb8   :  { %v160_v27 = vadd.f32 %v159_v26, %v158_v25 }
  0xba   :  { %v161_v28 = vrot.slane %v160_v27, 1 }
  0xbc   :  { %v180_v29 = vpop.xlane.xlu1 %179  ;;  %v162_v31 = vadd.f32 %v161_v28, %v160_v27 }
  0xbd   :  { %v181_v30 = vrot.slane %v180_v29, 4  ;;  %v168_v32 = vpop.xlane.xlu0 %167 }
  0xbe   :  { %v169_v34 = vrot.slane %v168_v32, 4  ;;  %215 = vpush %v162_v31 }
  0xbf   :  { %v182_v33 = vadd.f32 %v181_v30, %v180_v29 }
  0xc0   :  { %v170_v36 = vadd.f32 %v169_v34, %v168_v32 }
  0xc1   :  { %v183_v35 = vrot.slane %v182_v33, 2 }
  0xc2   :  { %v171_v38 = vrot.slane %v170_v36, 2 }
  0xc3   :  { %v184_v37 = vadd.f32 %v183_v35, %v182_v33 }
  0xc4   :  { %v172_v39 = vadd.f32 %v171_v38, %v170_v36 }
  0xc5   :  { %v185_v40 = vrot.slane %v184_v37, 1 }
  0xc6   :  { %v173_v41 = vrot.slane %v172_v39, 1 }
  0xc7   :  { %v186_v43 = vadd.f32 %v185_v40, %v184_v37 }
  0xc8   :  { %v174_v42 = vadd.f32 %v173_v41, %v172_v39 }
  0xca   :  { %217 = vpush %v174_v42 }
  0xcb   :  { %219 = vpush %v186_v43 }
  0xef   :  { %s216_s2 = spop %215 }
  0xf0   :  { %s164_s20 = smul.f32 0.0012019231, %s216_s2 }
  0xf2   :  { %190 = sst [smem:[#allocation8]] %s164_s20 }
  0xfb   :  { %s218_s21 = spop %217 }
  0xfc   :  { %s176_s22 = smul.f32 0.0016025641, %s218_s21  ;;  %s220_s23 = spop %219 }
  0xfd   :  { %s188_s24 = smul.f32 0.0013736264, %s220_s23 }
  0xfe   :  { %192 = sst [smem:[#allocation8 + $0x1]] %s176_s22  ;;  %s195_s25 = smul.f32 0.1, %s176_s22 }
  0xff   :  { %194 = sst [smem:[#allocation8 + $0x2]] %s188_s24  ;;  %s197_s27 = smul.f32 0.5, %s188_s24 }
 0x100   :  { %s196_s26 = sadd.f32 %s195_s25, %s164_s20 }
 0x102   :  { %s198_s28 = sadd.f32 %s197_s27, %s196_s26 }
 0x104   :  { %200 = sst [smem:[#allocation8 + $0x3]] %s198_s28 }
 0x105   :  { %232 = shalt.err (!%p229_p2)
}
 0x106   :  { %s236_s9 = smov [#allocation8]  }
 0x107   :  { %208 = dma.smem_to_hbm %s236_s9, 16, %s320_s3, [#allocation9]  }
 0x108   :  { %233 = dma.done.wait [#allocation9], 16  }
 0x109   :  { %234 = vsyncadd [#allocation9], 4294967280 }
 0x10a   :  { %212 = sfence }
 0x10b   :  { %213 = vsyncpa [#allocation9], 1 }

</bundles_post_ra>
